<compile_context>
chip_gen: v5e
topology: v5e:2x2
jax: 0.10.0
libtpu: 0.0.40
codegen_flags: <defaults>
</compile_context>

<pallas_src>
import jax
import jax.numpy as jnp
from jax.experimental import pallas as pl
from jax.experimental.pallas import tpu as pltpu


def _initial_velocity_kernel(slab_ref, out_ref):
    # slab_ref: (R, P)  row 0 holds x0 at lanes [0, C_in);
    #                   rows 1..C_in hold W^T at lanes [C_in+zpad, total);
    #                   everything else is zero.
    # out_ref:  (1, P)  lane-dense output row (padded to a multiple of 128).
    #
    # Sublane reduce over the slab == x0 ++ zeros(zpad) ++ fc1(ones), already
    # positioned at final lane offsets.  Single unmasked vst.
    out_ref[...] = jnp.sum(
        slab_ref[...].astype(jnp.float32), axis=0, keepdims=True
    ).astype(out_ref.dtype)


def initial_velocity_forward(x0, w, ddim, zpad=0):
    """x0: (C_in,); w: (F_out, C_in) with F_out = out_channels*ddim - C_in - zpad."""
    c_in = x0.shape[0]
    f_out = w.shape[0]
    total = c_in + zpad + f_out
    assert total % ddim == 0, "concat length must be divisible by ddim"

    # Lane dim padded to a multiple of 128 (lane-dense, unmasked output store);
    # sublane dim padded to a multiple of 8 (exact vreg tiling of the slab).
    padded = ((total + 127) // 128) * 128
    rows = ((c_in + 1 + 7) // 8) * 8

    slab = jnp.zeros((rows, padded), jnp.float32)
    # x0 at row 0, lanes [0, c_in).
    slab = slab.at[0, :c_in].set(x0.astype(jnp.float32))
    # W^T at rows [1, 1+c_in), lanes [c_in+zpad, total).  zpad lanes stay zero.
    slab = slab.at[1:1 + c_in, c_in + zpad:total].set(w.T.astype(jnp.float32))

    out_row = pl.pallas_call(
        _initial_velocity_kernel,
        out_shape=jax.ShapeDtypeStruct((1, padded), x0.dtype),
        in_specs=[pl.BlockSpec(memory_space=pltpu.MemorySpace.VMEM)],
        out_specs=pl.BlockSpec(memory_space=pltpu.MemorySpace.VMEM),
    )(slab)

    # Metadata-only slice + reshape back to (1, ddim, -1).
    return out_row[0, :total].reshape(1, ddim, total // ddim)


if __name__ == "__main__":
    # Small shapes consistent with the module's forward (x0 is a 1-D vector).
    in_channels = 4
    out_channels = 16
    ddim = 2

    key = jax.random.PRNGKey(0)
    kx, kw = jax.random.split(key)
    x0 = jax.random.normal(kx, (in_channels,), dtype=jnp.float32)

    # --- zpad = 0 case ---
    zpad = 0
    f_out = out_channels * ddim - in_channels - zpad   # 28
    w = jax.random.normal(kw, (f_out, in_channels), dtype=jnp.float32) * 0.1

    out = jax.block_until_ready(initial_velocity_forward(x0, w, ddim, zpad))

    ref = jnp.concatenate(
        [x0, jnp.zeros((zpad,), jnp.float32), w @ jnp.ones((in_channels,), jnp.float32)]
    ).reshape(1, ddim, -1)
    assert out.shape == (1, ddim, out_channels), out.shape
    assert jnp.allclose(out, ref, atol=1e-5, rtol=1e-5)

    # --- zpad > 0 case ---
    zpad2 = 2
    f_out2 = out_channels * ddim - in_channels - zpad2  # 26
    w2 = jax.random.normal(kw, (f_out2, in_channels), dtype=jnp.float32) * 0.1
    out2 = jax.block_until_ready(initial_velocity_forward(x0, w2, ddim, zpad2))
    ref2 = jnp.concatenate(
        [x0, jnp.zeros((zpad2,), jnp.float32), w2 @ jnp.ones((in_channels,), jnp.float32)]
    ).reshape(1, ddim, -1)
    assert out2.shape == (1, ddim, out_channels), out2.shape
    assert jnp.allclose(out2, ref2, atol=1e-5, rtol=1e-5)

    print("KERNEL_OK")
</pallas_src>

<mosaic_0001>
module attributes {stable_mosaic.version = 11 : i64} {
  func.func @_initial_velocity_kernel(%arg0: memref<8x128xf32, #tpu.memory_space<vmem>>, %arg1: memref<1x128xf32, #tpu.memory_space<vmem>>) attributes {dimension_semantics = [], scalar_prefetch = 0 : i64, scratch_operands = 0 : i64, tpu.core_type = #tpu.core_type<tc>} {
    %c0 = arith.constant 0 : index
    %c0_0 = arith.constant 0 : index
    %0 = vector.load %arg0[%c0, %c0_0] : memref<8x128xf32, #tpu.memory_space<vmem>>, vector<8x128xf32>
    %cst = arith.constant dense<0.000000e+00> : vector<128xf32>
    %1 = vector.multi_reduction <add>, %0, %cst [0] : vector<8x128xf32> to vector<128xf32>
    %2 = vector.shape_cast %1 : vector<128xf32> to vector<1x128xf32>
    %c0_1 = arith.constant 0 : index
    %c0_2 = arith.constant 0 : index
    %3 = vector.load %arg1[%c0_1, %c0_2] : memref<1x128xf32, #tpu.memory_space<vmem>>, vector<1x128xf32>
    tpu.vector_store %arg1[%c0_1, %c0_2], %2 {strides = array<i32>} : memref<1x128xf32, #tpu.memory_space<vmem>>, vector<1x128xf32>,
    return
  }
}

</mosaic_0001>

<bundles_post_ra>
// kernel: tpu_custom_call.1
= control target key start
LH: loop header
LB: loop body
LE: loop exit
PB: predicated region body
PF: predicated region fallthrough
CT: control target
= control target key end

     0   :  { %6 = vsyncpa [#allocation3], 0  ;;  %s120_s0 = inlined_call_operand.hbm [shape: f32[8,128], index: 0, kind: input, shape index: {}]   ;;  %s121_s1 = inlined_call_operand.hbm [shape: f32[1,128], index: 1, kind: output, shape index: {}]  }
   0x1   :  { %7 = vsyncpa [#allocation4], 0  ;;  %s13_s8 = sshll.u32 %s120_s0, 4  ;;  %s102_s9 = smov [#allocation2]   ;;  %s14_s8 = int_to_ptr.hbm [resolvable:$true] %s13_s8 }
   0x2   :  { %s15_s10 = sshll.u32 %s102_s9, 4  ;;  %s16_s10 = int_to_ptr.vmem [resolvable:$true] %s15_s10 }
   0x3   :  { %18 = dma.hbm_to_vmem [thread:$0]  %s14_s8, 128, %s16_s10, [#allocation3]  }
   0x4   :  { %98 = dma.done.wait [#allocation3], 128  }
   0x5   :  { %99 = vsyncadd [#allocation3], 4294967168  ;;  %v23_v0 = vld [vmem:[#allocation2] sm:$0xff]  ;;  %s103_s11 = smov [#allocation5]   ;;  %s38_s15 = sshll.u32 %s121_s1, 4  ;;  %s39_s15 = int_to_ptr.hbm [resolvable:$true] %s38_s15 }
   0x6   :  { %v24_v1 = vrot.slane %v23_v0, 4  ;;  %s36_s12 = sshll.u32 %s103_s11, 4  ;;  %s37_s12 = int_to_ptr.vmem [resolvable:$true] %s36_s12 }
   0x8   :  { %v25_v2 = vadd.f32 %v24_v1, %v23_v0 }
   0xa   :  { %v26_v3 = vrot.slane %v25_v2, 2 }
   0xc   :  { %v27_v4 = vadd.f32 %v26_v3, %v25_v2 }
   0xe   :  { %v28_v5 = vrot.slane %v27_v4, 1 }
  0x10   :  { %v29_v6 = vadd.f32 %v28_v5, %v27_v4 }
  0x12   :  { %30 = vst [vmem:[#allocation5] sm:$0x1] %v29_v6 }
  0x13   :  { %41 = dma.vmem_to_hbm [thread:$0]  %s37_s12, 16, %s39_s15, [#allocation4]  }
  0x14   :  { %100 = dma.done.wait [#allocation4], 16  }
  0x15   :  { %101 = vsyncadd [#allocation4], 4294967280 }
  0x16   :  { %46 = vsyncpa [#allocation3], 1 }
  0x17   :  { %47 = vsyncpa [#allocation4], 1 }

</bundles_post_ra>
